<compile_context>
chip_gen: v7x
topology: tpu7x:2x2x1
jax: 0.10.0
libtpu: 0.0.40
codegen_flags: <defaults>
</compile_context>

<pallas_src>
import math
import numpy as np
import jax
import jax.numpy as jnp
from jax.experimental import pallas as pl
from jax.experimental.pallas import tpu as pltpu


def _pos_enc_kernel(x_ref, pe_ref, p_ref, o_ref):
    """Fused PositionalEncoding forward for one (TILE_S, B) block.

    x_ref  : (TS, B, F)  raw input rows (xy in cols 0:2, segment in col F-1)
    pe_ref : (TS, 1, D)  sinusoidal PE rows, broadcast over batch in-kernel
    p_ref  : (8, D)      packed params: rows 0,1 = W_xy ; row 2 = W_seg ; row 3 = b_xy+b_seg
    o_ref  : (TS, B, D)
    """
    x = x_ref[...]                               # (TS, B, F)
    f = x.shape[-1]
    xy0 = x[:, :, 0:1]                           # (TS, B, 1)
    xy1 = x[:, :, 1:2]                           # (TS, B, 1)
    seg = x[:, :, f - 1:f]                       # (TS, B, 1)  (last feature column)

    p = p_ref[...]                               # (8, D)
    w0 = p[0:1, :][None]                         # (1, 1, D)
    w1 = p[1:2, :][None]                         # (1, 1, D)
    ws = p[2:3, :][None]                         # (1, 1, D)
    b = p[3:4, :][None]                          # (1, 1, D)

    base = pe_ref[...] + b                       # (TS, 1, D) -> batch-broadcast below
    # K=2 / K=1 contractions as VPU elementwise mul/add (cheaper than MXU at K<=2).
    o_ref[...] = xy0 * w0 + xy1 * w1 + seg * ws + base


def _choose_tile_s(S, B, D):
    """Seq-tile size: ~1024 output rows per tile, capped so double-buffered
    blocks stay far under v7x's 32 MiB default scoped VMEM (64 MiB physical)."""
    lanes_d = ((D + 127) // 128) * 128           # lane padding for D
    sub_b = ((B + 7) // 8) * 8                   # sublane padding for B
    # padded f32 bytes resident per seq-row: out block + x block + pe block
    bytes_per_s = 4 * (sub_b * lanes_d + sub_b * 128 + lanes_d)
    budget = 8 * 1024 * 1024                     # per-block budget; x2 buffers ~ 16 MiB
    ts = max(1, 1024 // max(B, 1))               # target ~1024 (S*B) rows per tile
    ts = min(ts, max(1, budget // bytes_per_s))
    ts = max(8, (ts // 8) * 8)                   # multiple of 8 (sublane rule on PE block)
    return S if S <= ts else ts


def make_sinusoidal_pe(d_model, max_len=256):
    """Same table as the PyTorch __init__, stored as (max_len, d_model)."""
    position = jnp.arange(max_len, dtype=jnp.float32)[:, None]                 # (L, 1)
    div_term = jnp.exp(jnp.arange(0, d_model, 2, dtype=jnp.float32)
                       * (-math.log(10000.0) / d_model))                       # (D/2,)
    pe = jnp.zeros((max_len, d_model), dtype=jnp.float32)
    pe = pe.at[:, 0::2].set(jnp.sin(position * div_term))
    pe = pe.at[:, 1::2].set(jnp.cos(position * div_term))
    return pe


def init_params(key, d_model):
    """Deterministic init matching nn.Linear shapes (uniform +-1/sqrt(fan_in))."""
    k1, k2, k3, k4 = jax.random.split(key, 4)
    lim_xy = 1.0 / math.sqrt(2.0)
    lim_seg = 1.0
    return {
        # stored transposed: (in_features, out_features)
        "wxy": jax.random.uniform(k1, (2, d_model), jnp.float32, -lim_xy, lim_xy),
        "bxy": jax.random.uniform(k2, (d_model,), jnp.float32, -lim_xy, lim_xy),
        "wseg": jax.random.uniform(k3, (1, d_model), jnp.float32, -lim_seg, lim_seg),
        "bseg": jax.random.uniform(k4, (d_model,), jnp.float32, -lim_seg, lim_seg),
    }


def positional_encoding_forward(x, params, pe_table):
    """Pallas forward. x: (S, B, F) with F >= 3. Returns (S, B, d_model) float32."""
    assert x.ndim == 3 and x.shape[-1] >= 3, "expected x of shape (S, B, F>=3)"
    S, B, F = x.shape
    D = params["wxy"].shape[1]
    assert S <= pe_table.shape[0], "sequence length exceeds PE table max_len"

    if x.dtype != jnp.float32:
        x = x.astype(jnp.float32)

    # Pack all tiny params into one (8, D) buffer: rows 0,1=W_xy; 2=W_seg; 3=b_xy+b_seg.
    packed = jnp.zeros((8, D), jnp.float32)
    packed = packed.at[0:2, :].set(params["wxy"])
    packed = packed.at[2, :].set(params["wseg"][0])
    packed = packed.at[3, :].set(params["bxy"] + params["bseg"])

    # PE passed as (S, 1, D) -- NO (S*B, D) broadcast materialization in HBM.
    pe3 = pe_table[:S][:, None, :]

    ts = _choose_tile_s(S, B, D)
    grid = (pl.cdiv(S, ts),)

    out = pl.pallas_call(
        _pos_enc_kernel,
        out_shape=jax.ShapeDtypeStruct((S, B, D), jnp.float32),
        grid=grid,
        in_specs=[
            pl.BlockSpec((ts, B, F), lambda i: (i, 0, 0)),   # raw x rows (slice in-kernel)
            pl.BlockSpec((ts, 1, D), lambda i: (i, 0, 0)),   # PE indexed by seq only
            pl.BlockSpec((8, D), lambda i: (0, 0)),          # packed params, resident
        ],
        out_specs=pl.BlockSpec((ts, B, D), lambda i: (i, 0, 0)),
        compiler_params=pltpu.CompilerParams(
            dimension_semantics=("parallel",)),              # megacore sharding on v7x
    )(x, pe3, packed)
    return out


def positional_encoding_reference(x, params, pe_table):
    """Pure-JAX reference mirroring the PyTorch forward."""
    S = x.shape[0]
    xf = x.astype(jnp.float32)
    x_xy = jnp.einsum("sbf,fd->sbd", xf[:, :, :2], params["wxy"]) + params["bxy"]
    x_seg = xf[:, :, -1:] * params["wseg"][0] + params["bseg"]
    return x_xy + pe_table[:S][:, None, :] + x_seg


if __name__ == "__main__":
    d_model = 32
    S, B, F = 8, 2, 3  # seq-major input: (seq_len, batch, [x, y, segment])

    key = jax.random.PRNGKey(0)
    kx, kp = jax.random.split(key)
    x = jax.random.normal(kx, (S, B, F), dtype=jnp.float32)
    params = init_params(kp, d_model)
    pe_table = make_sinusoidal_pe(d_model, max_len=256)

    fwd = jax.jit(positional_encoding_forward)
    out = jax.block_until_ready(fwd(x, params, pe_table))

    ref = positional_encoding_reference(x, params, pe_table)
    assert out.shape == (S, B, d_model)
    np.testing.assert_allclose(np.asarray(out), np.asarray(ref), rtol=1e-5, atol=1e-5)
    print("KERNEL_OK")
</pallas_src>

<mosaic_0001>
module attributes {stable_mosaic.version = 11 : i64} {
  func.func @_pos_enc_kernel(%arg0: i32, %arg1: memref<8x2x3xf32, #tpu.memory_space<vmem>>, %arg2: memref<8x1x32xf32, #tpu.memory_space<vmem>>, %arg3: memref<8x32xf32, #tpu.memory_space<vmem>>, %arg4: memref<8x2x32xf32, #tpu.memory_space<vmem>>) attributes {dimension_semantics = [#tpu.dimension_semantics<parallel>], iteration_bounds = array<i64: 1>, scalar_prefetch = 0 : i64, scratch_operands = 0 : i64, tpu.core_type = #tpu.core_type<tc>, window_params = [{transform_indices = @transform_0, window_bounds = array<i64: 8, 2, 3>}, {transform_indices = @transform_1, window_bounds = array<i64: 8, 1, 32>}, {pipeline_mode = #tpu.pipeline_mode<synchronous>, transform_indices = @transform_2, window_bounds = array<i64: 8, 32>}, {transform_indices = @transform_3, window_bounds = array<i64: 8, 2, 32>}]} {
    %c0 = arith.constant 0 : index
    %c0_0 = arith.constant 0 : index
    %c0_1 = arith.constant 0 : index
    %0 = vector.load %arg1[%c0, %c0_0, %c0_1] : memref<8x2x3xf32, #tpu.memory_space<vmem>>, vector<8x2x3xf32>
    %1 = vector.extract_strided_slice %0 {offsets = [0, 0, 0], sizes = [8, 2, 1], strides = [1, 1, 1]} : vector<8x2x3xf32> to vector<8x2x1xf32>
    %2 = vector.extract_strided_slice %0 {offsets = [0, 0, 1], sizes = [8, 2, 1], strides = [1, 1, 1]} : vector<8x2x3xf32> to vector<8x2x1xf32>
    %3 = vector.extract_strided_slice %0 {offsets = [0, 0, 2], sizes = [8, 2, 1], strides = [1, 1, 1]} : vector<8x2x3xf32> to vector<8x2x1xf32>
    %c0_2 = arith.constant 0 : index
    %c0_3 = arith.constant 0 : index
    %4 = vector.load %arg3[%c0_2, %c0_3] : memref<8x32xf32, #tpu.memory_space<vmem>>, vector<8x32xf32>
    %5 = vector.extract_strided_slice %4 {offsets = [0, 0], sizes = [1, 32], strides = [1, 1]} : vector<8x32xf32> to vector<1x32xf32>
    %6 = vector.shape_cast %5 : vector<1x32xf32> to vector<1x1x32xf32>
    %7 = vector.extract_strided_slice %4 {offsets = [1, 0], sizes = [1, 32], strides = [1, 1]} : vector<8x32xf32> to vector<1x32xf32>
    %8 = vector.shape_cast %7 : vector<1x32xf32> to vector<1x1x32xf32>
    %9 = vector.extract_strided_slice %4 {offsets = [2, 0], sizes = [1, 32], strides = [1, 1]} : vector<8x32xf32> to vector<1x32xf32>
    %10 = vector.shape_cast %9 : vector<1x32xf32> to vector<1x1x32xf32>
    %11 = vector.extract_strided_slice %4 {offsets = [3, 0], sizes = [1, 32], strides = [1, 1]} : vector<8x32xf32> to vector<1x32xf32>
    %12 = vector.shape_cast %11 : vector<1x32xf32> to vector<1x1x32xf32>
    %c0_4 = arith.constant 0 : index
    %c0_5 = arith.constant 0 : index
    %c0_6 = arith.constant 0 : index
    %13 = vector.load %arg2[%c0_4, %c0_5, %c0_6] : memref<8x1x32xf32, #tpu.memory_space<vmem>>, vector<8x1x32xf32>
    %14 = vector.broadcast %12 : vector<1x1x32xf32> to vector<8x1x32xf32>
    %15 = arith.addf %13, %14 : vector<8x1x32xf32>
    %16 = vector.broadcast %1 : vector<8x2x1xf32> to vector<8x2x32xf32>
    %17 = vector.broadcast %6 : vector<1x1x32xf32> to vector<8x2x32xf32>
    %18 = arith.mulf %16, %17 : vector<8x2x32xf32>
    %19 = vector.broadcast %2 : vector<8x2x1xf32> to vector<8x2x32xf32>
    %20 = vector.broadcast %8 : vector<1x1x32xf32> to vector<8x2x32xf32>
    %21 = arith.mulf %19, %20 : vector<8x2x32xf32>
    %22 = arith.addf %18, %21 : vector<8x2x32xf32>
    %23 = vector.broadcast %3 : vector<8x2x1xf32> to vector<8x2x32xf32>
    %24 = vector.broadcast %10 : vector<1x1x32xf32> to vector<8x2x32xf32>
    %25 = arith.mulf %23, %24 : vector<8x2x32xf32>
    %26 = arith.addf %22, %25 : vector<8x2x32xf32>
    %27 = vector.broadcast %15 : vector<8x1x32xf32> to vector<8x2x32xf32>
    %28 = arith.addf %26, %27 : vector<8x2x32xf32>
    %c0_7 = arith.constant 0 : index
    %c0_8 = arith.constant 0 : index
    %c0_9 = arith.constant 0 : index
    %29 = vector.load %arg4[%c0_7, %c0_8, %c0_9] : memref<8x2x32xf32, #tpu.memory_space<vmem>>, vector<8x2x32xf32>
    tpu.vector_store %arg4[%c0_7, %c0_8, %c0_9], %28 {strides = array<i32>} : memref<8x2x32xf32, #tpu.memory_space<vmem>>, vector<8x2x32xf32>,
    return
  }
  func.func @transform_0(%arg0: i32) -> (i32, i32, i32) {
    %c0_i32 = arith.constant 0 : i32
    %c0_i32_0 = arith.constant 0 : i32
    %c0_i32_1 = arith.constant 0 : i32
    return %arg0, %c0_i32, %c0_i32_0 : i32, i32, i32
  }
  func.func @transform_1(%arg0: i32) -> (i32, i32, i32) {
    %c0_i32 = arith.constant 0 : i32
    %c0_i32_0 = arith.constant 0 : i32
    %c0_i32_1 = arith.constant 0 : i32
    return %arg0, %c0_i32, %c0_i32_0 : i32, i32, i32
  }
  func.func @transform_2(%arg0: i32) -> (i32, i32) {
    %c0_i32 = arith.constant 0 : i32
    %c0_i32_0 = arith.constant 0 : i32
    %c0_i32_1 = arith.constant 0 : i32
    return %c0_i32, %c0_i32_0 : i32, i32
  }
  func.func @transform_3(%arg0: i32) -> (i32, i32, i32) {
    %c0_i32 = arith.constant 0 : i32
    %c0_i32_0 = arith.constant 0 : i32
    %c0_i32_1 = arith.constant 0 : i32
    return %arg0, %c0_i32, %c0_i32_0 : i32, i32, i32
  }
}

</mosaic_0001>

<bundles_post_ra>
// kernel: positional_encoding_forward.1
= control target key start
LH: loop header
LB: loop body
LE: loop exit
PB: predicated region body
PF: predicated region fallthrough
CT: control target
= control target key end

     0   :  { %v332_v2 = vmov 0   ;;  %s496_s0 = inlined_call_operand.vmem [shape: f32[8,2,3], index: 0, kind: input, shape index: {}]   ;;  %s497_s1 = inlined_call_operand.vmem [shape: f32[8,1,32], index: 1, kind: input, shape index: {}]   ;;  %s498_s2 = inlined_call_operand.vmem [shape: f32[8,32], index: 2, kind: input, shape index: {}]   ;;  %s499_s3 = inlined_call_operand.hbm [shape: f32[8,2,32], index: 3, kind: output, shape index: {}]  }
   0x1   :  { %v17_v0 = vld [vmem:[%s496_s0 + $0x4] sm:$0x3]  ;;  %v15_v1 = vld [vmem:[%s496_s0] sm:$0x3]  ;;  %303 = vset.pattern.permute.xlu1 %v332_v2  ;;  %302 = vset.pattern.permute.xlu0 %v332_v2  ;;  %v18_v3 = vld [vmem:[%s496_s0 + $0x6] sm:$0x3] }
   0x2   :  { %70 = vperm.xlu1 %303, %v17_v0   ;;  %60 = vperm.xlu0 %302, %v15_v1   ;;  %v16_v4 = vld [vmem:[%s496_s0 + $0x2] sm:$0x3] }
   0x3   :  { %8 = vsyncpa [#allocation3], 0  ;;  %v20_v5 = vld [vmem:[%s496_s0 + $0xa] sm:$0x3]  ;;  %v19_v6 = vld [vmem:[%s496_s0 + $0x8] sm:$0x3]  ;;  %v36_v15 = vlaneseq }
   0x4   :  { %v22_v7 = vld [vmem:[%s496_s0 + $0xe] sm:$0x3]  ;;  %v21_v8 = vld [vmem:[%s496_s0 + $0xc] sm:$0x3]  ;;  %v333_v9 = vmov 1   ;;  %v334_v10 = vmov 2  }
   0x5   :  { %v335_v13 = vmov 1966171168   ;;  %v37_v19 = vshrl.u32 %v36_v15, 7  ;;  %v23_v25 = vld [vmem:[%s498_s2] sm:$0xff]  ;;  %vm270_vm0 = vcmask 254976  }
   0x6   :  { %75 = vperm.xlu1 %303, %v18_v3   ;;  %65 = vperm.xlu0 %302, %v16_v4   ;;  %v34_v14 = vunpack.c.l.s4 %v335_v13  ;;  %v24_v39 = vld [vmem:[%s497_s1] sm:$0x1]  ;;  %v25_v41 = vld [vmem:[%s497_s1 + $0x1] sm:$0x1]  ;;  %v26_v44 = vld [vmem:[%s497_s1 + $0x2] sm:$0x1] }
   0x7   :  { %v144_v33 = vsub.s32 1, %v37_v19  ;;  %v396_v37 = vsub.s32 0, %v37_v19  ;;  %v196_v40 = vsub.s32 2, %v37_v19  ;;  %v28_v45 = vld [vmem:[%s497_s1 + $0x4] sm:$0x1] }
   0x8   :  { %v35_v18 = vunpack.c.0.s8 %v34_v14  ;;  %v27_v62 = vld [vmem:[%s497_s1 + $0x3] sm:$0x1]  ;;  %v30_v63 = vld [vmem:[%s497_s1 + $0x6] sm:$0x1] }
   0x9   :  { %v398_v38 = vrot.slane %v23_v25, %v144_v33  ;;  %v417_v48 = vrot.slane %v23_v25, %v396_v37  ;;  %v421_v51 = vrot.slane %v23_v25, %v196_v40 }
   0xa   :  { %85 = vperm.xlu1 %303, %v20_v5   ;;  %80 = vperm.xlu0 %302, %v19_v6   ;;  %v38_v22 = vsub.s32 %v35_v18, %v37_v19 }
   0xc   :  { %v39_v26 = vrot.slane %v23_v25, %v38_v22 }
   0xe   :  { %95 = vperm.xlu1 %303, %v22_v7   ;;  %90 = vperm.xlu0 %302, %v21_v8   ;;  %v40_v29 = vcombine.high %v39_v26, %v39_v26  ;;  %v29_v26 = vld [vmem:[%s497_s1 + $0x5] sm:$0x1] }
  0x10   :  { %v47_v32 = vrot.slane %v40_v29, %v38_v22 }
  0x12   :  { %305 = vset.pattern.permute.xlu1 %v333_v9  ;;  %304 = vset.pattern.permute.xlu0 %v333_v9  ;;  %v394_v36 = vcombine.high %v47_v32, %v47_v32 }
  0x13   :  { %115 = vperm.xlu1 %305, %v16_v4   ;;  %111 = vperm.xlu0 %304, %v15_v1  }
  0x14   :  { %v50_v46 = vadd.f32 %v394_v36, %v24_v39  ;;  %v51_v47 = vadd.f32 %v394_v36, %v25_v41  ;;  %v52_v52 = vadd.f32 %v394_v36, %v26_v44  ;;  %v54_v53 = vadd.f32 %v394_v36, %v28_v45 }
  0x16   :  { %v225_v58 = vrot.slane %v50_v46, %v396_v37  ;;  %v229_v60 = vrot.slane %v51_v47, %v396_v37  ;;  %v31_v46 = vld [vmem:[%s497_s1 + $0x7] sm:$0x1]  ;;  %s336_s1 = smov [#allocation2]  }
  0x17   :  { %119 = vperm.xlu1 %305, %v17_v0   ;;  %123 = vperm.xlu0 %304, %v18_v3   ;;  %s284_s17 = sshll.u32 %s336_s1, 4  ;;  %s285_s17 = int_to_ptr.vmem [resolvable:$true] %s284_s17 }
  0x18   :  { %s308_s18 = scalar_lea.vmem %s285_s17, 256  ;;  %p313_p1 = scmp.lt.s32.totalorder %s285_s17, %s285_s17 }
  0x19   :  { %p309_p0 = scmp.ne.s32.totalorder %s285_s17, %s308_s18  ;;  %p314_p2 = scmp.lt.s32.totalorder %s308_s18, %s308_s18 }
  0x1b   :  { %127 = vperm.xlu1 %305, %v19_v6   ;;  %131 = vperm.xlu0 %304, %v20_v5   ;;  %p315_p3 = por %p314_p2, %p313_p1 }
  0x1d   :  { %p316_p4 = pnand %p315_p3, %p309_p0 }
  0x1f   :  { %135 = vperm.xlu1 %305, %v21_v8   ;;  %139 = vperm.xlu0 %304, %v22_v7  }
  0x23   :  { %306 = vset.pattern.permute.xlu1 %v334_v10  ;;  %307 = vset.pattern.permute.xlu0 %v334_v10  ;;  %v53_v10 = vadd.f32 %v394_v36, %v27_v62 }
  0x24   :  { %163 = vperm.xlu1 %306, %v15_v1   ;;  %167 = vperm.xlu0 %307, %v16_v4  }
  0x28   :  { %171 = vperm.xlu1 %306, %v17_v0   ;;  %179 = vperm.xlu0 %307, %v19_v6   ;;  %v233_v6 = vrot.slane %v52_v52, %v396_v37 }
  0x2c   :  { %175 = vperm.xlu1 %306, %v18_v3   ;;  %187 = vperm.xlu0 %307, %v21_v8  }
  0x30   :  { %183 = vperm.xlu1 %306, %v20_v5  }
  0x34   :  { %191 = vperm.xlu1 %306, %v22_v7   ;;  %v241_v7 = vrot.slane %v54_v53, %v396_v37 }
  0x81   :  { %v71_v11 = vpop.permute.xlu1 %70  ;;  %v61_v12 = vpop.permute.xlu0 %60 }
  0x82   :  { %v102_v54 = vmul.f32 %v417_v48, %v61_v12  ;;  %v104_v4 = vmul.f32 %v417_v48, %v71_v11  ;;  %v56_v12 = vadd.f32 %v394_v36, %v30_v63 }
  0x84   :  { %v249_v32 = vrot.slane %v56_v12, %v396_v37 }
  0x85   :  { %v383_v16 = vpop.permute.xlu1 %75  ;;  %v66_v17 = vpop.permute.xlu0 %65 }
  0x86   :  { %v103_v55 = vmul.f32 %v417_v48, %v66_v17 }
  0x89   :  { %v385_v20 = vpop.permute.xlu1 %85  ;;  %v81_v21 = vpop.permute.xlu0 %80 }
  0x8a   :  { %v106_v5 = vmul.f32 %v417_v48, %v81_v21  ;;  %v107_v47 = vmul.f32 %v417_v48, %v385_v20 }
  0x8d   :  { %v387_v23 = vpop.permute.xlu1 %95  ;;  %v389_v24 = vpop.permute.xlu0 %90 }
  0x8e   :  { %v109_v20 = vmul.f32 %v417_v48, %v387_v23 }
  0x92   :  { %v116_v27 = vpop.permute.xlu1 %115  ;;  %v112_v28 = vpop.permute.xlu0 %111 }
  0x93   :  { %v147_v49 = vmul.f32 %v398_v38, %v116_v27  ;;  %v146_v50 = vmul.f32 %v398_v38, %v112_v28  ;;  %v105_v27 = vmul.f32 %v417_v48, %v383_v16  ;;  %v108_v28 = vmul.f32 %v417_v48, %v389_v24 }
  0x94   :  { %v55_v16 = vadd.f32 %v394_v36, %v29_v26 }
  0x95   :  { %v155_v0 = vadd.f32 %v147_v49, %v103_v55  ;;  %v154_v1 = vadd.f32 %v146_v50, %v102_v54  ;;  %v57_v54 = vadd.f32 %v394_v36, %v31_v46 }
  0x96   :  { %v120_v30 = vpop.permute.xlu1 %119  ;;  %v124_v31 = vpop.permute.xlu0 %123  ;;  %v245_v52 = vrot.slane %v55_v16, %v396_v37 }
  0x97   :  { %v148_v56 = vmul.f32 %v398_v38, %v120_v30  ;;  %v149_v14 = vmul.f32 %v398_v38, %v124_v31  ;;  %v237_v31 = vrot.slane %v53_v10, %v396_v37  ;;  %v253_v36 = vrot.slane %v57_v54, %v396_v37 }
  0x99   :  { %v156_v13 = vadd.f32 %v148_v56, %v104_v4  ;;  %v157_v33 = vadd.f32 %v149_v14, %v105_v27 }
  0x9a   :  { %v128_v34 = vpop.permute.xlu1 %127  ;;  %v132_v35 = vpop.permute.xlu0 %131 }
  0x9b   :  { %v150_v57 = vmul.f32 %v398_v38, %v128_v34  ;;  %v151_v34 = vmul.f32 %v398_v38, %v132_v35 }
  0x9d   :  { %v158_v15 = vadd.f32 %v150_v57, %v106_v5  ;;  %v159_v50 = vadd.f32 %v151_v34, %v107_v47 }
  0x9e   :  { %v136_v42 = vpop.permute.xlu1 %135  ;;  %v406_v43 = vpop.permute.xlu0 %139 }
  0x9f   :  { %v152_v17 = vmul.f32 %v398_v38, %v136_v42  ;;  %v153_v55 = vmul.f32 %v398_v38, %v406_v43 }
  0xa1   :  { %v160_v39 = vadd.f32 %v152_v17, %v108_v28 }
  0xa3   :  { %v164_v59 = vpop.permute.xlu1 %163  ;;  %v168_v61 = vpop.permute.xlu0 %167 }
  0xa4   :  { %v198_v2 = vmul.f32 %v421_v51, %v164_v59  ;;  %v199_v3 = vmul.f32 %v421_v51, %v168_v61  ;;  %v161_v61 = vadd.f32 %v153_v55, %v109_v20 }
  0xa6   :  { %v206_v8 = vadd.f32 %v198_v2, %v154_v1  ;;  %v207_v9 = vadd.f32 %v199_v3, %v155_v0 }
  0xa7   :  { %v172_v18 = vpop.permute.xlu1 %171  ;;  %v180_v11 = vpop.permute.xlu0 %179 }
  0xa8   :  { %v262_v19 = vadd.f32 %v225_v58, %v206_v8  ;;  %v263_v21 = vadd.f32 %v229_v60, %v207_v9  ;;  %v200_v22 = vmul.f32 %v421_v51, %v172_v18  ;;  %v202_v25 = vmul.f32 %v421_v51, %v180_v11 }
  0xaa   :  { %271 = vst.msk [vmem:[#allocation2] sm:$0x3] %vm270_vm0, %v262_v19  ;;  %272 = vst.msk [vmem:[#allocation2 + $0x2] sm:$0x3] %vm270_vm0, %v263_v21  ;;  %v208_v29 = vadd.f32 %v200_v22, %v156_v13  ;;  %v210_v30 = vadd.f32 %v202_v25, %v158_v15 }
  0xab   :  { %v176_v40 = vpop.permute.xlu1 %175  ;;  %v188_v41 = vpop.permute.xlu0 %187 }
  0xac   :  { %v264_v42 = vadd.f32 %v233_v6, %v208_v29  ;;  %v266_v24 = vadd.f32 %v241_v7, %v210_v30  ;;  %v201_v44 = vmul.f32 %v421_v51, %v176_v40  ;;  %v204_v45 = vmul.f32 %v421_v51, %v188_v41 }
  0xae   :  { %273 = vst.msk [vmem:[#allocation2 + $0x4] sm:$0x3] %vm270_vm0, %v264_v42  ;;  %275 = vst.msk [vmem:[#allocation2 + $0x8] sm:$0x3] %vm270_vm0, %v266_v24  ;;  %v209_v35 = vadd.f32 %v201_v44, %v157_v33  ;;  %v212_v49 = vadd.f32 %v204_v45, %v160_v39 }
  0xaf   :  { %v184_v53 = vpop.permute.xlu1 %183 }
  0xb0   :  { %v265_v56 = vadd.f32 %v237_v31, %v209_v35  ;;  %v268_v57 = vadd.f32 %v249_v32, %v212_v49  ;;  %v203_v58 = vmul.f32 %v421_v51, %v184_v53 }
  0xb2   :  { %274 = vst.msk [vmem:[#allocation2 + $0x6] sm:$0x3] %vm270_vm0, %v265_v56  ;;  %277 = vst.msk [vmem:[#allocation2 + $0xc] sm:$0x3] %vm270_vm0, %v268_v57  ;;  %v211_v59 = vadd.f32 %v203_v58, %v159_v50 }
  0xb3   :  { %v192_v60 = vpop.permute.xlu1 %191 }
  0xb4   :  { %v267_v62 = vadd.f32 %v245_v52, %v211_v59  ;;  %v205_v63 = vmul.f32 %v421_v51, %v192_v60 }
  0xb6   :  { %276 = vst.msk [vmem:[#allocation2 + $0xa] sm:$0x3] %vm270_vm0, %v267_v62  ;;  %v213_v38 = vadd.f32 %v205_v63, %v161_v61 }
  0xb8   :  { %v269_v43 = vadd.f32 %v253_v36, %v213_v38 }
  0xba   :  { %278 = vst.msk [vmem:[#allocation2 + $0xe] sm:$0x3] %vm270_vm0, %v269_v43 }
  0xbb   :  { %319 = shalt.err (!%p316_p4)
}
  0xbc   :  { %s320_s21 = scalar_lea.hbm %s499_s3, 256 }
  0xbd   :  { %p321_p5 = scmp.ne.s32.totalorder %s499_s3, %s320_s21  ;;  %p324_p6 = scmp.lt.u32.totalorder %s320_s21, %s499_s3 }
  0xbf   :  { %p326_p7 = pnand %p324_p6, %p321_p5 }
  0xc1   :  { %329 = shalt.err (!%p326_p7)
}
  0xc2   :  { %s337_s26 = smov 32   ;;  %s338_s27 = smov 2  }
  0xc3   :  { %290 = dma.vmem_to_hbm [thread:$0]  %s285_s17, 256, %s499_s3, [#allocation3], %s337_s26, %s337_s26, %s338_s27  }
  0xc4   :  { %330 = dma.done.wait [#allocation3], 256  }
  0xc5   :  { %331 = vsyncadd [#allocation3], 4294967040 }
  0xc6   :  { %294 = vsyncpa [#allocation3], 1 }

</bundles_post_ra>
